<compile_context>
chip_gen: v5e
topology: v5e:2x2
jax: 0.10.0
libtpu: 0.0.40
codegen_flags: <defaults>
</compile_context>

<pallas_src>
import functools

import jax
import jax.numpy as jnp
from jax.experimental import pallas as pl
from jax.experimental.pallas import tpu as pltpu


_VMEM_LIMIT = 40 * 1024 * 1024     # > v5e's 16 MiB default, < v7x's 64 MiB phys
_STEP_BUDGET = 24 * 1024 * 1024    # target per-grid-step VMEM footprint


def _round_up(x, m):
    return (x + m - 1) // m * m


def _acc_rows_base(c_blk):
    """Rows per accumulation sub-block so a f32 accumulator stays ~<= 32 KiB."""
    rows = 8
    while rows < 256 and rows * 2 * c_blk * 4 <= 32 * 1024:
        rows *= 2
    return rows


def _channel_block(n_ch):
    """Channel tile (lane axis).  Tiled only when large and 128-divisible."""
    if n_ch > 512 and n_ch % 128 == 0:
        for cand in (512, 384, 256, 128):
            if n_ch % cand == 0:
                return cand
    return n_ch


def _scheme(ksize):
    """Pick (g, m, r) for the grouped window sum:
         out[t] = sum_{j<m} S_g[t + j*g] + sum_{i<r} P[t + m*g + i],
         S_g[t] = sum_{i<g} P[t + i].
    (ksize, 1, 0) means the direct k-tap sum (best for small k)."""
    best, best_cost = (ksize, 1, 0), ksize + 0.7
    for g in range(2, ksize):
        m, r = divmod(ksize, g)
        cost = (g + 0.7) + (m + r + 0.7)   # loads + ~store weight per row
        if cost < best_cost:
            best, best_cost = (g, m, r), cost
    return best


def _for_blocks(fn, total, acc_rows):
    """Call fn(base, rows) over [0, total) in acc_rows-row blocks.

    Full blocks run in a fori_loop; a non-multiple tail is handled with one
    static block that overlaps the previous one (rewrites a few identical
    rows) so arbitrary sizes stay correct without ragged shapes."""
    if total <= acc_rows:
        fn(0, total)
        return
    nfull = total // acc_rows

    def body(i, carry):
        fn(pl.multiple_of(i * acc_rows, 8), acc_rows)
        return carry

    jax.lax.fori_loop(0, nfull, body, 0, unroll=(nfull <= 32))
    if total % acc_rows:
        fn(total - acc_rows, acc_rows)


def _emit_window_avg(read_win, write_out, read_sg, write_sg, *,
                     n_out, ksize, scheme, acc_rows):
    """Windowed mean over an edge-replicated window of n_out + ksize - 1 rows.

    read_win(s, n)  -> f32 rows [s, s+n) of the window
    write_out(s, n, v), read_sg(s, n), write_sg(s, n, v): group-sum scratch IO.
    """
    g, m, r = scheme
    inv_k = 1.0 / float(ksize)

    if g == ksize:                      # direct small-k path
        def direct_blk(base, rows):
            acc = read_win(base, rows)
            for i in range(1, ksize):
                acc = acc + read_win(base + i, rows)
            write_out(base, rows, acc * inv_k)
        _for_blocks(direct_blk, n_out, acc_rows)
        return

    # Stage 1: sums of g consecutive rows (needed for n_out + (m-1)*g rows).
    n_sg = n_out + (m - 1) * g

    def sg_blk(base, rows):
        acc = read_win(base, rows)
        for i in range(1, g):
            acc = acc + read_win(base + i, rows)
        write_sg(base, rows, acc)
    _for_blocks(sg_blk, n_sg, acc_rows)

    # Stage 2: combine m group sums (+ r leftover taps read directly).
    def out_blk(base, rows):
        acc = read_sg(base, rows)
        for jg in range(1, m):
            acc = acc + read_sg(base + jg * g, rows)
        for i in range(r):
            acc = acc + read_win(base + m * g + i, rows)
        write_out(base, rows, acc * inv_k)
    _for_blocks(out_blk, n_out, acc_rows)


# ---------------------------------------------------------------------------
# Primary path: auto-pipelined (batch-block, channel-block) grid.  The whole
# sequence for a few batch elements is resident per step, so Pallas overlaps
# the HBM DMA of step i+1 with the compute of step i for free.
# ---------------------------------------------------------------------------
def _moving_avg_batch_kernel(x_ref, o_ref, pw_ref, sg_ref, *,
                             seq_len, pad, ksize, scheme, acc_rows, dense_len):
    bb = x_ref.shape[0]
    c = x_ref.shape[2]

    # Edge-replicated window in VMEM.  The extra read+write pass stays hidden
    # under the HBM DMA once the taps are grouped (see header note).
    def copy_blk(base, rows):
        pw_ref[:, pl.ds(pad + base, rows), :] = x_ref[:, pl.ds(base, rows), :]
    _for_blocks(copy_blk, seq_len, acc_rows)
    if pad > 0:
        pw_ref[:, 0:pad, :] = jnp.broadcast_to(x_ref[:, 0:1, :], (bb, pad, c))
        pw_ref[:, pad + seq_len:2 * pad + seq_len, :] = jnp.broadcast_to(
            x_ref[:, seq_len - 1:seq_len, :], (bb, pad, c))

    def read_win(s, n):
        return pw_ref[:, pl.ds(s, n), :].astype(jnp.float32)

    def write_out(s, n, v):
        o_ref[:, pl.ds(s, n), :] = v.astype(o_ref.dtype)

    def read_sg(s, n):
        return sg_ref[:, pl.ds(s, n), :]

    def write_sg(s, n, v):
        sg_ref[:, pl.ds(s, n), :] = v

    _emit_window_avg(read_win, write_out, read_sg, write_sg,
                     n_out=dense_len, ksize=ksize, scheme=scheme,
                     acc_rows=acc_rows)


# ---------------------------------------------------------------------------
# Long-sequence path: grid = (batch, channel-tile, time-tile).  x stays in HBM
# (memory_space=ANY); each time tile's haloed window (t_blk + k - 1 rows) is
# DMA'd manually with double buffering: tile j+1's window is issued before we
# wait on tile j's, so the DMA overlaps with this tile's compute.  Edge tiles
# (first tile / tiles running past the end) have compile-time plans.
# ---------------------------------------------------------------------------
def _moving_avg_tiled_kernel(x_hbm, o_ref, w_ref, sg_ref, sem, *,
                             ksize, pad, t_blk, t_in, n_tiles, c_blk,
                             specials, scheme, acc_rows):
    b = pl.program_id(0)
    ci = pl.program_id(1)
    j = pl.program_id(2)
    slot = j % 2
    col0 = ci * c_blk

    def issue_window(jt, sl):
        """Start the HBM->VMEM DMA for time tile `jt` into window buffer `sl`."""
        is_int = jt > 0
        for jj in specials:
            if jj != 0:
                is_int = jnp.logical_and(is_int, jt != jj)

        @pl.when(is_int)
        def _():
            d0 = jt * t_blk - pad
            pltpu.make_async_copy(
                x_hbm.at[b, pl.ds(d0, t_in), pl.ds(col0, c_blk)],
                w_ref.at[sl, pl.ds(0, t_in), :],
                sem.at[sl]).start()

        for jj, (src, dst, ln, _lf, _rf) in specials.items():
            @pl.when(jt == jj)
            def _(src=src, dst=dst, ln=ln):
                pltpu.make_async_copy(
                    x_hbm.at[b, pl.ds(src, ln), pl.ds(col0, c_blk)],
                    w_ref.at[sl, pl.ds(dst, ln), :],
                    sem.at[sl]).start()

    def wait_window(jt, sl):
        """Wait for the DMA issued by issue_window(jt, sl) (matching shapes)."""
        is_int = jt > 0
        for jj in specials:
            if jj != 0:
                is_int = jnp.logical_and(is_int, jt != jj)

        @pl.when(is_int)
        def _():
            pltpu.make_async_copy(
                x_hbm.at[b, pl.ds(0, t_in), pl.ds(col0, c_blk)],
                w_ref.at[sl, pl.ds(0, t_in), :],
                sem.at[sl]).wait()

        for jj, (src, dst, ln, _lf, _rf) in specials.items():
            @pl.when(jt == jj)
            def _(dst=dst, ln=ln):
                pltpu.make_async_copy(
                    x_hbm.at[b, pl.ds(0, ln), pl.ds(col0, c_blk)],
                    w_ref.at[sl, pl.ds(dst, ln), :],
                    sem.at[sl]).wait()

    # Warm-up: the first tile of every (batch, channel-tile) row fetches its
    # own window (rows are self-contained, so megacore sharding stays safe).
    @pl.when(j == 0)
    def _():
        issue_window(j, slot)

    # Prefetch the next tile's window into the other buffer (overlap with
    # this tile's compute).  No prefetch across row boundaries.
    @pl.when(j + 1 < n_tiles)
    def _():
        issue_window(j + 1, 1 - slot)

    wait_window(j, slot)

    w = w_ref.at[slot]

    # Edge-replication fills for the special tiles (<= pad rows each).
    for jj, (_src, dst, ln, lf, rf) in specials.items():
        if lf == 0 and rf == 0:
            continue

        @pl.when(j == jj)
        def _(dst=dst, ln=ln, lf=lf, rf=rf):
            if lf > 0:   # replicate x[0] in front of the window
                w[pl.ds(0, lf), :] = jnp.broadcast_to(
                    w[pl.ds(dst, 1), :], (lf, c_blk))
            if rf > 0:   # replicate x[L-1] after the last valid row
                w[pl.ds(dst + ln, rf), :] = jnp.broadcast_to(
                    w[pl.ds(dst + ln - 1, 1), :], (rf, c_blk))

    def read_win(s, n):
        return w[pl.ds(s, n), :].astype(jnp.float32)

    def write_out(s, n, v):
        o_ref[pl.ds(s, n), :] = v.astype(o_ref.dtype)

    def read_sg(s, n):
        return sg_ref[pl.ds(s, n), :]

    def write_sg(s, n, v):
        sg_ref[pl.ds(s, n), :] = v

    _emit_window_avg(read_win, write_out, read_sg, write_sg,
                     n_out=t_blk, ksize=ksize, scheme=scheme,
                     acc_rows=acc_rows)


# ---------------------------------------------------------------------------
# Wrapper
# ---------------------------------------------------------------------------
def moving_avg(x, kernel_size, stride, *, time_block=2048, _force_path=None):
    """Pallas equivalent of Autoformer's moving_avg.forward.

    x: (B, L, C).  Returns (B, out_len, C), out_len matching
    nn.AvgPool1d(kernel_size, stride) on the edge-replicated series.
    """
    batch, seq_len, n_ch = x.shape
    ksize = int(kernel_size)
    stride = int(stride)
    pad = (ksize - 1) // 2
    dense_len = seq_len + 2 * pad - ksize + 1   # stride-1 output length
    if dense_len < 1:
        raise ValueError("kernel_size too large for the sequence length")

    c_blk = _channel_block(n_ch)
    n_c_blocks = n_ch // c_blk
    itemsize = x.dtype.itemsize
    scheme = _scheme(ksize)
    g, m, _r = scheme
    acc_base = _acc_rows_base(c_blk)

    # --- primary (batch-blocked) path sizing --------------------------------
    n_sg_a = (dense_len + (m - 1) * g) if g != ksize else 8
    per_b_bytes = c_blk * (
        2 * seq_len * itemsize            # double-buffered input block
        + 2 * dense_len * itemsize        # double-buffered output block
        + (seq_len + 2 * pad) * itemsize  # edge-replicated window scratch
        + n_sg_a * 4)                     # group-sum scratch (f32)
    fits_a = per_b_bytes <= _STEP_BUDGET

    # --- tiled (long-sequence) path sizing -----------------------------------
    acc_b = acc_base
    t_blk = min(int(time_block), seq_len - ksize + 1,
                _STEP_BUDGET // max(1, c_blk * (4 * itemsize + 4)))
    t_blk = (t_blk // acc_b) * acc_b
    tiled_ok = (t_blk >= acc_b and t_blk > pad and dense_len > t_blk
                and seq_len >= t_blk + ksize - 1)

    if _force_path == "tiled":
        if not tiled_ok:
            raise ValueError("tiled path not applicable for this shape")
        use_tiled = True
    elif _force_path == "batch":
        use_tiled = False
    else:
        use_tiled = (not fits_a) and tiled_ok

    if use_tiled:
        t_in = t_blk + ksize - 1
        t_in_alloc = _round_up(t_in, 8)
        n_tiles = pl.cdiv(dense_len, t_blk)
        n_sg_b = max(8, (t_blk + (m - 1) * g) if g != ksize else 8)

        # Compile-time DMA plans for the edge tiles:
        #   (src_row, dst_row, copy_rows, left_fill_rows, right_fill_rows)
        # Fills are capped at the rows actually read by *valid* outputs, so
        # they never exceed ~pad rows.
        specials = {}
        ln0 = min(t_in - pad, seq_len)
        need0 = min(t_in, dense_len + ksize - 1)
        specials[0] = (0, pad, ln0, pad, max(0, need0 - (pad + ln0)))
        for jj in range(1, n_tiles):
            d0 = jj * t_blk - pad
            if d0 + t_in > seq_len:
                ln = seq_len - d0
                need = min(t_in, dense_len - jj * t_blk + ksize - 1)
                specials[jj] = (d0, 0, ln, 0, max(0, need - ln))

        kernel = functools.partial(
            _moving_avg_tiled_kernel,
            ksize=ksize, pad=pad, t_blk=t_blk, t_in=t_in, n_tiles=n_tiles,
            c_blk=c_blk, specials=specials, scheme=scheme, acc_rows=acc_b)

        dense = pl.pallas_call(
            kernel,
            out_shape=jax.ShapeDtypeStruct((batch, dense_len, n_ch), x.dtype),
            grid_spec=pltpu.PrefetchScalarGridSpec(
                num_scalar_prefetch=0,
                grid=(batch, n_c_blocks, n_tiles),
                in_specs=[pl.BlockSpec(memory_space=pl.ANY)],
                out_specs=pl.BlockSpec((None, t_blk, c_blk),
                                       lambda b, c, j: (b, j, c)),
                scratch_shapes=[
                    pltpu.VMEM((2, t_in_alloc, c_blk), x.dtype),
                    pltpu.VMEM((n_sg_b, c_blk), jnp.float32),
                    pltpu.SemaphoreType.DMA((2,)),
                ]),
            compiler_params=pltpu.CompilerParams(
                dimension_semantics=("parallel", "parallel", "arbitrary"),
                vmem_limit_bytes=_VMEM_LIMIT),
        )(x)
    else:
        # Batch block size: amortize grid-step overhead for small shapes while
        # keeping the f32 accumulator in vregs and enough steps for megacore.
        bb = min(batch, max(1, _STEP_BUDGET // max(1, per_b_bytes)))
        row_bytes = seq_len * c_blk * itemsize
        bb = min(bb, max(1, (1 << 20) // max(1, row_bytes)))
        bb = min(bb, max(1, acc_base // 8))
        if row_bytes >= (128 << 10):
            bb = min(bb, max(1, (batch + 7) // 8))
        while batch % bb:
            bb -= 1
        acc_rows = max(8, (acc_base // bb) // 8 * 8)

        kernel = functools.partial(
            _moving_avg_batch_kernel,
            seq_len=seq_len, pad=pad, ksize=ksize, scheme=scheme,
            acc_rows=acc_rows, dense_len=dense_len)

        dense = pl.pallas_call(
            kernel,
            out_shape=jax.ShapeDtypeStruct((batch, dense_len, n_ch), x.dtype),
            grid_spec=pltpu.PrefetchScalarGridSpec(
                num_scalar_prefetch=0,
                grid=(batch // bb, n_c_blocks),
                in_specs=[pl.BlockSpec((bb, seq_len, c_blk),
                                       lambda b, c: (b, 0, c))],
                out_specs=pl.BlockSpec((bb, dense_len, c_blk),
                                       lambda b, c: (b, 0, c)),
                scratch_shapes=[
                    pltpu.VMEM((bb, seq_len + 2 * pad, c_blk), x.dtype),
                    pltpu.VMEM((bb, max(8, n_sg_a), c_blk), jnp.float32),
                ]),
            compiler_params=pltpu.CompilerParams(
                dimension_semantics=("parallel", "parallel"),
                vmem_limit_bytes=_VMEM_LIMIT),
        )(x)

    if stride > 1:
        # TODO(synk): stride > 1 (unused by Autoformer's decomposition) is
        # handled by decimating the dense result with an XLA slice instead of
        # sublane-strided stores inside the kernel.
        dense = dense[:, ::stride, :]
    return dense


def moving_avg_ref(x, kernel_size, stride):
    """Pure-JAX reference matching the PyTorch module's semantics."""
    pad = (kernel_size - 1) // 2
    front = jnp.repeat(x[:, 0:1, :], pad, axis=1)
    end = jnp.repeat(x[:, -1:, :], pad, axis=1)
    xp = jnp.concatenate([front, x, end], axis=1).astype(jnp.float32)
    s = jax.lax.reduce_window(
        xp, 0.0, jax.lax.add,
        window_dimensions=(1, kernel_size, 1),
        window_strides=(1, stride, 1),
        padding="VALID")
    return (s / kernel_size).astype(x.dtype)


if __name__ == "__main__":
    key = jax.random.PRNGKey(0)
    k1, k2, k3, k4 = jax.random.split(key, 4)

    # 1) Small odd-kernel, stride-1 config (direct tap path, batch-blocked).
    x1 = jax.random.normal(k1, (2, 16, 32), dtype=jnp.float32)
    out1 = jax.block_until_ready(moving_avg(x1, 5, 1))
    ref1 = moving_avg_ref(x1, 5, 1)
    assert out1.shape == ref1.shape, (out1.shape, ref1.shape)
    assert jnp.allclose(out1, ref1, atol=1e-5, rtol=1e-5), "mismatch (small)"

    # 2) Autoformer default kernel_size=25 -> grouped two-stage accumulation.
    x2 = jax.random.normal(k2, (2, 96, 64), dtype=jnp.float32)
    out2 = jax.block_until_ready(moving_avg(x2, 25, 1))
    ref2 = moving_avg_ref(x2, 25, 1)
    assert out2.shape == ref2.shape, (out2.shape, ref2.shape)
    assert jnp.allclose(out2, ref2, atol=1e-4, rtol=1e-4), "mismatch (k=25)"

    # 3) Tiled long-sequence path (forced with a small tile to stay cheap):
    #    exercises the double-buffered window DMA, interior tiles, the
    #    front-replicated first tile and an end-overrunning tile.
    x3 = jax.random.normal(k3, (2, 600, 128), dtype=jnp.float32)
    out3 = jax.block_until_ready(
        moving_avg(x3, 25, 1, time_block=128, _force_path="tiled"))
    ref3 = moving_avg_ref(x3, 25, 1)
    assert out3.shape == ref3.shape, (out3.shape, ref3.shape)
    assert jnp.allclose(out3, ref3, atol=1e-4, rtol=1e-4), "mismatch (tiled)"

    # 4) Even kernel + stride > 1 (general AvgPool1d configuration).
    x4 = jax.random.normal(k4, (2, 33, 32), dtype=jnp.float32)
    out4 = jax.block_until_ready(moving_avg(x4, 4, 2))
    ref4 = moving_avg_ref(x4, 4, 2)
    assert out4.shape == ref4.shape, (out4.shape, ref4.shape)
    assert jnp.allclose(out4, ref4, atol=1e-5, rtol=1e-5), "mismatch (stride)"

    print("KERNEL_OK")
</pallas_src>

<mosaic_0001>
module attributes {stable_mosaic.version = 11 : i64} {
  func.func @_moving_avg_batch_kernel(%arg0: i32, %arg1: i32, %arg2: memref<2x16x32xf32, #tpu.memory_space<vmem>>, %arg3: memref<2x16x32xf32, #tpu.memory_space<vmem>>, %arg4: memref<2x20x32xf32, #tpu.memory_space<vmem>>, %arg5: memref<2x8x32xf32, #tpu.memory_space<vmem>>) attributes {dimension_semantics = [#tpu.dimension_semantics<parallel>, #tpu.dimension_semantics<parallel>], iteration_bounds = array<i64: 1, 1>, scalar_prefetch = 0 : i64, scratch_operands = 2 : i64, tpu.core_type = #tpu.core_type<tc>, window_params = [{transform_indices = @transform_0, window_bounds = array<i64: 2, 16, 32>}, {transform_indices = @transform_1, window_bounds = array<i64: 2, 16, 32>}]} {
    %c0 = arith.constant 0 : index
    %c0_0 = arith.constant 0 : index
    %c0_1 = arith.constant 0 : index
    %0 = vector.load %arg2[%c0, %c0_0, %c0_1] : memref<2x16x32xf32, #tpu.memory_space<vmem>>, vector<2x16x32xf32>
    %c0_2 = arith.constant 0 : index
    %c2 = arith.constant 2 : index
    %c0_3 = arith.constant 0 : index
    %1 = vector.load %arg4[%c0_2, %c2, %c0_3] : memref<2x20x32xf32, #tpu.memory_space<vmem>>, vector<2x16x32xf32>
    tpu.vector_store %arg4[%c0_2, %c2, %c0_3], %0 {strides = array<i32>} : memref<2x20x32xf32, #tpu.memory_space<vmem>>, vector<2x16x32xf32>,
    %c0_4 = arith.constant 0 : index
    %c0_5 = arith.constant 0 : index
    %c0_6 = arith.constant 0 : index
    %2 = vector.load %arg2[%c0_4, %c0_5, %c0_6] : memref<2x16x32xf32, #tpu.memory_space<vmem>>, vector<2x1x32xf32>
    %3 = vector.shape_cast %2 : vector<2x1x32xf32> to vector<2x1x32xf32>
    %4 = vector.broadcast %3 : vector<2x1x32xf32> to vector<2x2x32xf32>
    %c0_7 = arith.constant 0 : index
    %c0_8 = arith.constant 0 : index
    %c0_9 = arith.constant 0 : index
    %5 = vector.load %arg4[%c0_7, %c0_8, %c0_9] : memref<2x20x32xf32, #tpu.memory_space<vmem>>, vector<2x2x32xf32>
    tpu.vector_store %arg4[%c0_7, %c0_8, %c0_9], %4 {strides = array<i32>} : memref<2x20x32xf32, #tpu.memory_space<vmem>>, vector<2x2x32xf32>,
    %c0_10 = arith.constant 0 : index
    %c15 = arith.constant 15 : index
    %c0_11 = arith.constant 0 : index
    %6 = vector.load %arg2[%c0_10, %c15, %c0_11] : memref<2x16x32xf32, #tpu.memory_space<vmem>>, vector<2x1x32xf32>
    %7 = vector.shape_cast %6 : vector<2x1x32xf32> to vector<2x1x32xf32>
    %8 = vector.broadcast %7 : vector<2x1x32xf32> to vector<2x2x32xf32>
    %c0_12 = arith.constant 0 : index
    %c18 = arith.constant 18 : index
    %c0_13 = arith.constant 0 : index
    %9 = vector.load %arg4[%c0_12, %c18, %c0_13] : memref<2x20x32xf32, #tpu.memory_space<vmem>>, vector<2x2x32xf32>
    tpu.vector_store %arg4[%c0_12, %c18, %c0_13], %8 {strides = array<i32>} : memref<2x20x32xf32, #tpu.memory_space<vmem>>, vector<2x2x32xf32>,
    %c0_14 = arith.constant 0 : index
    %c0_15 = arith.constant 0 : index
    %c0_16 = arith.constant 0 : index
    %10 = vector.load %arg4[%c0_14, %c0_15, %c0_16] : memref<2x20x32xf32, #tpu.memory_space<vmem>>, vector<2x16x32xf32>
    %c0_17 = arith.constant 0 : index
    %c1 = arith.constant 1 : index
    %c0_18 = arith.constant 0 : index
    %11 = vector.load %arg4[%c0_17, %c1, %c0_18] : memref<2x20x32xf32, #tpu.memory_space<vmem>>, vector<2x16x32xf32>
    %12 = arith.addf %10, %11 : vector<2x16x32xf32>
    %c0_19 = arith.constant 0 : index
    %c2_20 = arith.constant 2 : index
    %c0_21 = arith.constant 0 : index
    %13 = vector.load %arg4[%c0_19, %c2_20, %c0_21] : memref<2x20x32xf32, #tpu.memory_space<vmem>>, vector<2x16x32xf32>
    %14 = arith.addf %12, %13 : vector<2x16x32xf32>
    %c0_22 = arith.constant 0 : index
    %c3 = arith.constant 3 : index
    %c0_23 = arith.constant 0 : index
    %15 = vector.load %arg4[%c0_22, %c3, %c0_23] : memref<2x20x32xf32, #tpu.memory_space<vmem>>, vector<2x16x32xf32>
    %16 = arith.addf %14, %15 : vector<2x16x32xf32>
    %c0_24 = arith.constant 0 : index
    %c4 = arith.constant 4 : index
    %c0_25 = arith.constant 0 : index
    %17 = vector.load %arg4[%c0_24, %c4, %c0_25] : memref<2x20x32xf32, #tpu.memory_space<vmem>>, vector<2x16x32xf32>
    %18 = arith.addf %16, %17 : vector<2x16x32xf32>
    %cst = arith.constant 2.000000e-01 : f32
    %19 = vector.broadcast %cst : f32 to vector<2x16x32xf32>
    %20 = arith.mulf %18, %19 : vector<2x16x32xf32>
    %c0_26 = arith.constant 0 : index
    %c0_27 = arith.constant 0 : index
    %c0_28 = arith.constant 0 : index
    %21 = vector.load %arg3[%c0_26, %c0_27, %c0_28] : memref<2x16x32xf32, #tpu.memory_space<vmem>>, vector<2x16x32xf32>
    tpu.vector_store %arg3[%c0_26, %c0_27, %c0_28], %20 {strides = array<i32>} : memref<2x16x32xf32, #tpu.memory_space<vmem>>, vector<2x16x32xf32>,
    return
  }
  func.func @transform_0(%arg0: i32, %arg1: i32) -> (i32, i32, i32) {
    %c0_i32 = arith.constant 0 : i32
    %c0_i32_0 = arith.constant 0 : i32
    return %arg0, %c0_i32, %arg1 : i32, i32, i32
  }
  func.func @transform_1(%arg0: i32, %arg1: i32) -> (i32, i32, i32) {
    %c0_i32 = arith.constant 0 : i32
    %c0_i32_0 = arith.constant 0 : i32
    return %arg0, %c0_i32, %arg1 : i32, i32, i32
  }
}

</mosaic_0001>

<bundles_post_ra>
// kernel: tpu_custom_call.1
= control target key start
LH: loop header
LB: loop body
LE: loop exit
PB: predicated region body
PF: predicated region fallthrough
CT: control target
= control target key end

     0   :  { %6 = vsyncpa [#allocation5], 0  ;;  %s204_s0 = inlined_call_operand.hbm [shape: f32[2,16,32], index: 0, kind: input, shape index: {}]   ;;  %s205_s1 = inlined_call_operand.hbm [shape: f32[2,16,32], index: 1, kind: output, shape index: {}]  }
   0x1   :  { %7 = vsyncpa [#allocation6], 0  ;;  %s12_s8 = sshll.u32 %s204_s0, 4  ;;  %s170_s9 = smov [#allocation4]   ;;  %s13_s8 = int_to_ptr.hbm [resolvable:$true] %s12_s8 }
   0x2   :  { %s14_s10 = sshll.u32 %s170_s9, 4  ;;  %s171_s11 = smov 128   ;;  %s15_s10 = int_to_ptr.vmem [resolvable:$true] %s14_s10 }
   0x3   :  { %s172_s12 = smov 8  }
   0x4   :  { %20 = dma.hbm_to_vmem [thread:$0]  %s13_s8, 512, %s15_s10, [#allocation5], %s171_s11, %s171_s11, %s172_s12  }
   0x5   :  { %166 = dma.done.wait [#allocation5], 512  }
   0x6   :  { %167 = vsyncadd [#allocation5], 4294966784  ;;  %vm29_vm0 = vcmask 261120   ;;  %v25_v0 = vld [vmem:[#allocation4] sm:$0xff]  ;;  %v26_v1 = vld [vmem:[#allocation4 + $0x8] sm:$0xff]  ;;  %vm38_vm1 = vcmask 254976  }
   0x7   :  { %v27_v2 = vld [vmem:[#allocation4 + $0x10] sm:$0xff]  ;;  %30 = vst.msk [vmem:[#allocation2 + $0x2] sm:$0xff] %vm29_vm0, %v25_v0  ;;  %v28_v3 = vld [vmem:[#allocation4 + $0x18] sm:$0xff]  ;;  %v114_v4 = vld [vmem:[#allocation4] ss:$0 sm:$0xff]  ;;  %s173_s0 = smov [#allocation7]  }
   0x8   :  { %31 = vst.msk [vmem:[#allocation2 + $0xa] sm:$0xff] %vm29_vm0, %v26_v1  ;;  %v115_v5 = vld [vmem:[#allocation4 + $0x10] ss:$0 sm:$0xff]  ;;  %v116_v6 = vld [vmem:[#allocation4 + $0xf] ss:$0 sm:$0xff]  ;;  %s95_s13 = sshll.u32 %s173_s0, 4  ;;  %s96_s13 = int_to_ptr.vmem [resolvable:$true] %s95_s13 }
   0x9   :  { %32 = vst.msk [vmem:[#allocation2 + $0x1a] sm:$0xff] %vm29_vm0, %v27_v2  ;;  %v117_v7 = vld [vmem:[#allocation4 + $0x1f] ss:$0 sm:$0xff]  ;;  %s97_s16 = sshll.u32 %s205_s1, 4  ;;  %s98_s16 = int_to_ptr.hbm [resolvable:$true] %s97_s16 }
   0xa   :  { %33 = vst.msk [vmem:[#allocation2 + $0x22] sm:$0xff] %vm29_vm0, %v28_v3 }
   0xb   :  { %39 = vst.msk [vmem:[#allocation2] sm:$0x3] %vm38_vm1, %v114_v4 }
   0xc   :  { %40 = vst.msk [vmem:[#allocation2 + $0x18] sm:$0x3] %vm38_vm1, %v115_v5 }
   0xd   :  { %45 = vst.msk [vmem:[#allocation2 + $0x12] sm:$0x3] %vm38_vm1, %v116_v6 }
   0xe   :  { %46 = vst.msk [vmem:[#allocation2 + $0x2a] sm:$0x3] %vm38_vm1, %v117_v7  ;;  %v59_v24 = vld [vmem:[#allocation2 + $0x2] sm:$0xff] }
   0xf   :  { %v48_v8 = vld [vmem:[#allocation2 + $0x8] sm:$0xff] }
  0x10   :  { %v52_v9 = vld [vmem:[#allocation2 + $0x9] sm:$0xff]  ;;  %v61_v29 = vld [vmem:[#allocation2 + $0x1a] sm:$0xff] }
  0x11   :  { %v60_v10 = vld [vmem:[#allocation2 + $0xa] sm:$0xff]  ;;  %v56_v11 = vadd.f32 %v52_v9, %v48_v8  ;;  %v50_v12 = vld [vmem:[#allocation2 + $0x20] sm:$0xff] }
  0x12   :  { %v54_v13 = vld [vmem:[#allocation2 + $0x21] sm:$0xff] }
  0x13   :  { %v62_v14 = vld [vmem:[#allocation2 + $0x22] sm:$0xff]  ;;  %v64_v15 = vadd.f32 %v60_v10, %v56_v11  ;;  %v58_v16 = vadd.f32 %v54_v13, %v50_v12  ;;  %v49_v20 = vld [vmem:[#allocation2 + $0x18] sm:$0xff] }
  0x14   :  { %v47_v17 = vld [vmem:[#allocation2] sm:$0xff]  ;;  %v68_v22 = vld [vmem:[#allocation2 + $0xb] sm:$0xff] }
  0x15   :  { %v51_v18 = vld [vmem:[#allocation2 + $0x1] sm:$0xff]  ;;  %v53_v21 = vld [vmem:[#allocation2 + $0x19] sm:$0xff]  ;;  %v66_v23 = vadd.f32 %v62_v14, %v58_v16  ;;  %v72_v26 = vadd.f32 %v68_v22, %v64_v15  ;;  %v76_v30 = vld [vmem:[#allocation2 + $0xc] sm:$0xff] }
  0x16   :  { %v55_v19 = vadd.f32 %v51_v18, %v47_v17  ;;  %v57_v25 = vadd.f32 %v53_v21, %v49_v20  ;;  %v70_v27 = vld [vmem:[#allocation2 + $0x23] sm:$0xff]  ;;  %v69_v37 = vld [vmem:[#allocation2 + $0x1b] sm:$0xff] }
  0x17   :  { %v74_v31 = vadd.f32 %v70_v27, %v66_v23  ;;  %v67_v32 = vld [vmem:[#allocation2 + $0x3] sm:$0xff]  ;;  %v80_v34 = vadd.f32 %v76_v30, %v72_v26 }
  0x18   :  { %v63_v28 = vadd.f32 %v59_v24, %v55_v19  ;;  %v65_v33 = vadd.f32 %v61_v29, %v57_v25  ;;  %v78_v35 = vld [vmem:[#allocation2 + $0x24] sm:$0xff]  ;;  %v77_v43 = vld [vmem:[#allocation2 + $0x1c] sm:$0xff] }
  0x19   :  { %v82_v38 = vadd.f32 %v78_v35, %v74_v31  ;;  %v75_v39 = vld [vmem:[#allocation2 + $0x4] sm:$0xff]  ;;  %v84_v41 = vmul.f32 0.2, %v80_v34 }
  0x1a   :  { %v71_v36 = vadd.f32 %v67_v32, %v63_v28  ;;  %v73_v40 = vadd.f32 %v69_v37, %v65_v33 }
  0x1b   :  { %v86_v44 = vmul.f32 0.2, %v82_v38  ;;  %88 = vst.msk [vmem:[#allocation7 + $0x8] sm:$0xff] %vm29_vm0, %v84_v41 }
  0x1c   :  { %v79_v42 = vadd.f32 %v75_v39, %v71_v36  ;;  %v81_v45 = vadd.f32 %v77_v43, %v73_v40 }
  0x1d   :  { %90 = vst.msk [vmem:[#allocation7 + $0x18] sm:$0xff] %vm29_vm0, %v86_v44 }
  0x1e   :  { %v83_v46 = vmul.f32 0.2, %v79_v42  ;;  %v85_v47 = vmul.f32 0.2, %v81_v45 }
  0x20   :  { %87 = vst.msk [vmem:[#allocation7] sm:$0xff] %vm29_vm0, %v83_v46 }
  0x21   :  { %89 = vst.msk [vmem:[#allocation7 + $0x10] sm:$0xff] %vm29_vm0, %v85_v47 }
  0x22   :  { %103 = dma.vmem_to_hbm [thread:$0]  %s96_s13, 512, %s98_s16, [#allocation6], %s171_s11, %s171_s11, %s172_s12  }
  0x23   :  { %168 = dma.done.wait [#allocation6], 512  }
  0x24   :  { %169 = vsyncadd [#allocation6], 4294966784 }
  0x25   :  { %108 = vsyncpa [#allocation5], 1 }
  0x26   :  { %109 = vsyncpa [#allocation6], 1 }

</bundles_post_ra>
